<compile_context>
chip_gen: v7x
topology: tpu7x:2x2x1
jax: 0.10.0
libtpu: 0.0.40
codegen_flags: <defaults>
</compile_context>

<pallas_src>
from dataclasses import dataclass

import jax
import jax.numpy as jnp
from jax import lax
from jax.experimental import pallas as pl
from jax.experimental.pallas import tpu as pltpu


def _round_up(x, m):
    return ((x + m - 1) // m) * m


# ----------------------------------------------------------------------------- camera


@dataclass
class Camera:
    full_proj_transform: jnp.ndarray  # (4, 4), applied as row-vector x @ P
    image_height: int
    image_width: int
    fx: float
    fy: float


# ------------------------------ kernel 1: merged src/target projection (channel-major)


def _project_kernel(proj_ref, intr_ref, xyz_ref, opa_ref, scl_ref, out_ref):
    # grid = (camera, n_tile); xyz_ref (3, BN), opa/scl (1, BN), out (8, BN); N on lanes.
    cam = pl.program_id(0)
    img_w = intr_ref[cam, 0]
    img_h = intr_ref[cam, 1]
    fx = intr_ref[cam, 2]
    fy = intr_ref[cam, 3]

    x = xyz_ref[0:1, :]
    y = xyz_ref[1:2, :]
    z = xyz_ref[2:3, :]

    def P(i, j):  # scalar reads from SMEM (dynamic camera index)
        return proj_ref[cam, i, j]

    # xyz @ P[:3,:3] + P[3:4,:3]  (only x/y columns needed)
    ux = x * P(0, 0) + y * P(1, 0) + z * P(2, 0) + P(3, 0)
    uy = x * P(0, 1) + y * P(1, 1) + z * P(2, 1) + P(3, 1)
    reg = x * P(0, 3) + y * P(1, 3) + z * P(2, 3) + P(3, 3)   # depths

    inv = 1.0 / (reg + 1e-4)
    x2d = ((ux * inv + 1.0) * img_w - 1.0) * 0.5
    y2d = ((uy * inv + 1.0) * img_h - 1.0) * 0.5

    cov1d = scl_ref[0:1, :] * scl_ref[0:1, :]
    fxi = fx * inv
    fyi = fy * inv
    cxr = cov1d * fxi * fxi + 0.3
    cyr = cov1d * fyi * fyi + 0.3
    det = cxr * cyr
    zeros = jnp.zeros_like(x2d)

    # TODO(synk): on v5e the 8 single-sublane row stores serialize on the lone vst slot; the
    #             kernel is HBM-bound so this is left as-is (low priority per review).
    out_ref[0:1, :] = x2d
    out_ref[1:2, :] = y2d
    out_ref[2:3, :] = reg
    # NOTE: matches the reference exactly (it overwrites conical_x with conical_x/det,
    # conical_y with conical_y/det using the pre-division det) -- not the algebraic 2x2 inverse.
    out_ref[3:4, :] = cxr / det
    out_ref[4:5, :] = zeros
    out_ref[5:6, :] = cyr / det
    out_ref[6:7, :] = opa_ref[0:1, :]
    out_ref[7:8, :] = zeros


def project_both_cameras_pallas(xyz_pair, cameras, opacity, scales, block_n=1024):
    """One pallas_call projecting (src_means3D, src_cam) and (target_means3D, target_cam).

    Returns (2, 8, Npad): channels [x2d, y2d, depth, conic_x, conic_xy, conic_y, opacity, 0].
    The target camera's conic/opacity channels are computed but unused (VPU slack, HBM-bound).
    """
    N = xyz_pair[0].shape[0]
    Npad = _round_up(N, block_n)

    xyz_all = jnp.zeros((2, 3, Npad), jnp.float32)
    xyz_all = xyz_all.at[0, :, :N].set(xyz_pair[0].astype(jnp.float32).T)
    xyz_all = xyz_all.at[1, :, :N].set(xyz_pair[1].astype(jnp.float32).T)
    opa_t = jnp.zeros((1, Npad), jnp.float32).at[0, :N].set(
        opacity.astype(jnp.float32).reshape(-1))
    scl_t = jnp.zeros((1, Npad), jnp.float32).at[0, :N].set(
        scales.astype(jnp.float32)[:, 0])

    proj_all = jnp.stack([c.full_proj_transform for c in cameras]).astype(jnp.float32)
    intr_all = jnp.array(
        [[float(c.image_width), float(c.image_height), float(c.fx), float(c.fy)]
         for c in cameras], jnp.float32)

    out = pl.pallas_call(
        _project_kernel,
        out_shape=jax.ShapeDtypeStruct((2, 8, Npad), jnp.float32),
        grid=(2, Npad // block_n),
        in_specs=[
            pl.BlockSpec(memory_space=pltpu.MemorySpace.SMEM),          # (2, 4, 4) proj
            pl.BlockSpec(memory_space=pltpu.MemorySpace.SMEM),          # (2, 4)   intrinsics
            pl.BlockSpec((None, 3, block_n), lambda c, i: (c, 0, i)),
            pl.BlockSpec((1, block_n), lambda c, i: (0, i)),
            pl.BlockSpec((1, block_n), lambda c, i: (0, i)),
        ],
        out_specs=pl.BlockSpec((None, 8, block_n), lambda c, i: (c, 0, i)),
        compiler_params=pltpu.CompilerParams(
            dimension_semantics=("arbitrary", "parallel")),
    )(proj_all, intr_all, xyz_all, opa_t, scl_t)
    return out


# -------------------- kernel 2: fused pairwise squared dists + per-tile partial top-K


def _make_dist2_topk_kernel(K):
    def kernel(p_ref, gT_ref, vals_ref, idx_ref):
        bm = p_ref.shape[0]
        bn = gT_ref.shape[1]
        # augmented rows make the (bm,128)@(128,bn) MXU dot equal |x - y|^2
        d2 = jnp.dot(p_ref[...], gT_ref[...], preferred_element_type=jnp.float32)
        col = lax.broadcasted_iota(jnp.int32, (bm, bn), 1) + pl.program_id(1) * bn
        x = d2
        for k in range(K):                                   # static unroll, K = 8
            m = jnp.min(x, axis=-1, keepdims=True)           # (bm, 1) lane reduce
            cand = jnp.where(x <= m, col, jnp.int32(2147483647))
            amin = jnp.min(cand, axis=-1, keepdims=True)      # lowest column achieving the min
            vals_ref[:, k:k + 1] = m
            idx_ref[:, k:k + 1] = amin
            x = jnp.where(col == amin, jnp.float32(3.0e38), x)   # knock out the selected column
    return kernel


def knn_topk_pallas(particles, gaussians, K, lane_pad=128, bm=256, bn=1024):
    """K nearest gaussians per particle (squared L2) without materializing the (M, N) matrix.

    Returns (d2_top, idx_top), both (M, K), sorted ascending by distance (frnn return_sorted).
    """
    M, Cp = particles.shape
    N, Cg = gaussians.shape
    p = particles.astype(jnp.float32)
    g = gaussians.astype(jnp.float32)

    # Re-center both point sets (distance-preserving) to reduce cancellation in the
    # |x|^2 - 2x.y + |y|^2 expansion (correctness note from review).
    center = jnp.mean(g, axis=0, keepdims=True)
    p = p - center
    g = g - center

    Mpad = _round_up(M, bm)
    Npad = _round_up(N, bn)

    # p = [x, |x|^2, 1, 0...],   gT columns = [-2y, 1, |y|^2, 0...]  ->  p @ gT == |x-y|^2
    p_aug = jnp.zeros((Mpad, lane_pad), jnp.float32)
    p_aug = p_aug.at[:M, :Cp].set(p)
    p_aug = p_aug.at[:M, Cp].set(jnp.sum(p * p, axis=-1))
    p_aug = p_aug.at[:M, Cp + 1].set(1.0)

    gT_aug = jnp.zeros((lane_pad, Npad), jnp.float32)
    gT_aug = gT_aug.at[:Cg, :N].set(-2.0 * g.T)
    gT_aug = gT_aug.at[Cg, :N].set(1.0)
    gT_aug = gT_aug.at[Cg + 1, :N].set(jnp.sum(g * g, axis=-1))
    gT_aug = gT_aug.at[Cg + 1, N:].set(3.0e37)   # padded gaussian columns -> huge distance

    n_m = Mpad // bm
    n_n = Npad // bn
    vals, idxs = pl.pallas_call(
        _make_dist2_topk_kernel(K),
        out_shape=(jax.ShapeDtypeStruct((n_n, Mpad, K), jnp.float32),
                   jax.ShapeDtypeStruct((n_n, Mpad, K), jnp.int32)),
        grid=(n_m, n_n),
        in_specs=[pl.BlockSpec((bm, lane_pad), lambda i, j: (i, 0)),
                  pl.BlockSpec((lane_pad, bn), lambda i, j: (0, j))],
        out_specs=(pl.BlockSpec((None, bm, K), lambda i, j: (j, i, 0)),
                   pl.BlockSpec((None, bm, K), lambda i, j: (j, i, 0))),
        compiler_params=pltpu.CompilerParams(
            dimension_semantics=("parallel", "parallel"),
            vmem_limit_bytes=32 * 1024 * 1024),
    )(p_aug, gT_aug)

    # (n_n, Mpad, K) candidates -> exact global top-K per particle (tiny XLA top_k)
    vals_c = jnp.transpose(vals[:, :M, :], (1, 0, 2)).reshape(M, n_n * K)
    idxs_c = jnp.transpose(idxs[:, :M, :], (1, 0, 2)).reshape(M, n_n * K)
    neg_v, pos = lax.top_k(-vals_c, K)
    idx_top = jnp.take_along_axis(idxs_c, pos, axis=1)
    return -neg_v, idx_top


# --------------------------------------------------------- kernel 3: per-pair losses

# gathered per-Gaussian table channels (10, K, Mpad)
#   0 gsrc_x, 1 gsrc_y, 2 conic_x, 3 conic_xy, 4 conic_y, 5 opacity, 6 depth_src,
#   7 gtgt_x, 8 gtgt_y, 9 depth_tgt
# per-particle channels (6, Mpad):
#   0 px, 1 py, 2 tpx, 3 tpy, 4 depthmap_val, 5 depth_lookup_ok


def _pair_loss_kernel(gat_ref, perp_ref, valid_ref, err_ref, derr_ref, hasd_ref):
    K = valid_ref.shape[0]
    bm = valid_ref.shape[1]

    gx = gat_ref[0]; gy = gat_ref[1]
    cx = gat_ref[2]; cxy = gat_ref[3]; cy = gat_ref[4]
    opa = gat_ref[5]; ds = gat_ref[6]
    tgx = gat_ref[7]; tgy = gat_ref[8]; dt = gat_ref[9]

    px = perp_ref[0:1, :]; py = perp_ref[1:2, :]
    tpx = perp_ref[2:3, :]; tpy = perp_ref[3:4, :]
    dval = perp_ref[4:5, :]
    dvalid_p = perp_ref[5:6, :] > 0.5

    valid = valid_ref[...] > 0.5                         # (K, BM)
    dvalid = valid & dvalid_p & (dt != 0.0)

    dx = gx - px
    dy = gy - py
    # NOTE: matches the reference exactly: power uses (cx + dx*dx + cy*dy*dy), not cx*dx*dx.
    power = jnp.minimum(-0.5 * (cx + dx * dx + cy * dy * dy) - cxy * dx * dy, 0.0)
    alpha = jnp.where(valid, jnp.clip(opa * jnp.exp(power), 0.0, 0.99), 0.0)

    # influence_k = alpha_k * prod_{first_valid < j <= k, valid}(1 - alpha_j)
    # (reference quirk: product inclusive of k, normalized by the first valid pair's transparency).
    # Direct masked prefix product over the K = 8 sublane rows: 3 roll+mul steps, no log/exp.
    kvec = lax.broadcasted_iota(jnp.int32, (K, bm), 0)
    kpos = jnp.where(valid, kvec, K)
    fk = jnp.min(kpos, axis=0, keepdims=True)            # first valid row per particle
    t = jnp.where(valid & (kvec > fk), 1.0 - alpha, 1.0)
    prod = t
    shift = 1
    while shift < K:                                     # Hillis-Steele inclusive scan
        rolled = pltpu.roll(prod, shift=shift, axis=0)
        prod = jnp.where(kvec >= shift, prod * rolled, prod)
        shift *= 2
    infl = jnp.where(valid, alpha * prod, 0.0)

    dist_src = jnp.sqrt(dx * dx + dy * dy)
    tdx = tgx - tpx
    tdy = tgy - tpy
    dist_tgt = jnp.sqrt(tdx * tdx + tdy * tdy)

    raw_err = jnp.abs(dist_tgt * dt - dist_src * ds) * infl
    depth_norm = jnp.abs(dt + ds) * 0.5
    err = jnp.where(valid, raw_err / jnp.maximum(depth_norm, 0.1), 0.0)
    err_ref[...] = jnp.sum(err, axis=0, keepdims=True)    # reduce K in-kernel -> (1, BM)

    safe_dt = jnp.where(dt == 0.0, 1.0, dt)
    safe_dv = jnp.where(dval == 0.0, 1.0, dval)
    our_disp = jnp.clip(1.0 / safe_dt, 0.0, 1000.0)       # exact 1/x for reference parity
    gt_disp = jnp.clip(1.0 / safe_dv, 0.0, 1000.0)
    derr = jnp.where(dvalid, jnp.abs(our_disp - gt_disp) * infl, 0.0)
    derr_ref[...] = jnp.sum(derr, axis=0, keepdims=True)
    hasd_ref[...] = jnp.max(dvalid.astype(jnp.float32), axis=0, keepdims=True)


def pair_loss_pallas(gat, perp, valid, block_m=256):
    K = gat.shape[1]
    Mpad = gat.shape[2]
    return pl.pallas_call(
        _pair_loss_kernel,
        out_shape=(jax.ShapeDtypeStruct((1, Mpad), jnp.float32),
                   jax.ShapeDtypeStruct((1, Mpad), jnp.float32),
                   jax.ShapeDtypeStruct((1, Mpad), jnp.float32)),
        grid=(Mpad // block_m,),
        in_specs=[pl.BlockSpec((10, K, block_m), lambda i: (0, 0, i)),
                  pl.BlockSpec((6, block_m), lambda i: (0, i)),
                  pl.BlockSpec((K, block_m), lambda i: (0, i))],
        out_specs=(pl.BlockSpec((1, block_m), lambda i: (0, i)),
                   pl.BlockSpec((1, block_m), lambda i: (0, i)),
                   pl.BlockSpec((1, block_m), lambda i: (0, i))),
        compiler_params=pltpu.CompilerParams(dimension_semantics=("parallel",)),
    )(gat, perp, valid)


# --------------------------------------------------------------- TrackingLoss.forward


def tracking_loss(src_camera, target_camera, src_means3D, target_means3D, opacity,
                  scales, segmentation, src_particles, target_particles, particles_seg,
                  depthmap, K=8, r=4, per_segment=True):
    N = src_means3D.shape[0]
    M = src_particles.shape[0]

    # one merged projection launch for both cameras
    proj = project_both_cameras_pallas(
        (src_means3D, target_means3D), (src_camera, target_camera), opacity, scales)
    means2D_src = proj[0, 0:2, :N]       # (2, N) channel-major
    depths_src = proj[0, 2, :N]          # (N,)

    # per-Gaussian attribute table (10, N) gathered once by the KNN indices
    table = jnp.concatenate([
        proj[0, 0:2, :N],                # gsrc x, y
        proj[0, 3:7, :N],                # conic_x, conic_xy, conic_y, opacity
        proj[0, 2:3, :N],                # depth_src
        proj[1, 0:2, :N],                # gtgt x, y
        proj[1, 2:3, :N],                # depth_tgt
    ], axis=0)

    if per_segment:
        seg_g = (2.0 * r) * segmentation.astype(jnp.float32).reshape(-1)
        g_wseg = jnp.concatenate([means2D_src.T, seg_g[:, None]], axis=1)
        seg_p = (2.0 * r) * particles_seg.astype(jnp.float32).reshape(-1)
        p_wseg = jnp.concatenate(
            [src_particles.astype(jnp.float32), seg_p[:, None]], axis=1)
    else:
        g_wseg = means2D_src.T
        p_wseg = src_particles.astype(jnp.float32)

    # frnn_grid_points equivalent: K nearest within radius r, distance-sorted, -1 outside.
    # TODO(synk): frnn's spatial-hash acceleration is not ported; the fused brute-force
    #             per-tile top-K gives the same neighbor sets without the (M,N) HBM matrix.
    d2_top, idx_top = knn_topk_pallas(p_wseg, g_wseg, K)
    raw_knn = jnp.where(d2_top < float(r * r), idx_top, -1)

    # _gather_knn (static-shape version; all M*K slots kept + valid mask)
    idx0 = jnp.where(raw_knn == -1, 0, raw_knn)
    depths_knn = depths_src[idx0]                           # (M, K), unsorted (distance order)
    order = jnp.argsort(depths_knn, axis=-1)
    knn_sorted = jnp.take_along_axis(idx0, order, axis=-1)
    # reference applies the UNSORTED depth mask to depth-sorted indices; reproduce that quirk
    valid = depths_knn > 0.01

    # depthmap lookup (per particle; target_particles_gather is the same point for all K slots)
    dm = depthmap[0]                                        # depthmap.squeeze(0)
    h, w = dm.shape
    tpx = target_particles[:, 0].astype(jnp.float32)
    tpy = target_particles[:, 1].astype(jnp.float32)
    tix = jnp.round(tpx).astype(jnp.int32)
    tiy = jnp.round(tpy).astype(jnp.int32)
    inb = (tiy < h) & (tix < w) & (tiy >= 0) & (tix >= 0)
    dvals = dm[jnp.clip(tiy, 0, h - 1), jnp.clip(tix, 0, w - 1)]
    dvalid_p = inb & (dvals != 0.0)

    # single gather of the (10, N) table with padded (K, Mpad) indices -> lane-dense pair input
    # TODO(synk): the gather could be fused into the pair-loss kernel (scalar-prefetch indices +
    #             manual-DMA row gather) to remove this remaining pair-table HBM pass.
    block_m = 256
    Mpad = _round_up(M, block_m)
    idx_kM = jnp.zeros((K, Mpad), jnp.int32).at[:, :M].set(knn_sorted.T)
    gat = jnp.take(table, idx_kM.reshape(-1), axis=1).reshape(10, K, Mpad)

    def pad_row(v):
        return jnp.zeros((Mpad,), jnp.float32).at[:M].set(v.astype(jnp.float32))

    perp = jnp.stack([
        pad_row(src_particles[:, 0]), pad_row(src_particles[:, 1]),
        pad_row(tpx), pad_row(tpy), pad_row(dvals),
        pad_row(dvalid_p.astype(jnp.float32))], axis=0)                 # (6, Mpad)
    valid_pad = jnp.zeros((K, Mpad), jnp.float32).at[:, :M].set(
        valid.T.astype(jnp.float32))

    err_row, derr_row, hasd_row = pair_loss_pallas(gat, perp, valid_pad, block_m=block_m)

    # scatter_sum + mean == total-sum / number-of-unique-particles-with-valid-neighbors
    sum_err = jnp.sum(err_row[0, :M])
    sum_derr = jnp.sum(derr_row[0, :M])
    has_valid = jnp.any(valid, axis=1)
    num_unique = jnp.sum(has_valid.astype(jnp.float32))
    # NOTE: guarded against the degenerate "no valid neighbor" case (reference would NaN).
    mean_err = jnp.where(num_unique > 0, sum_err / jnp.maximum(num_unique, 1.0), 0.0)

    hv = has_valid.astype(jnp.int32)
    rank = jnp.cumsum(hv) - hv                              # == torch.unique(...)[1] per particle
    has_dvalid = hasd_row[0, :M] > 0.5
    dsize = (jnp.max(jnp.where(has_dvalid, rank, -1)) + 1).astype(jnp.float32)
    mean_depth_err = jnp.where(dsize > 0, sum_derr / jnp.maximum(dsize, 1.0), 0.0)
    return mean_err, mean_depth_err


# ----------------------------------------------------------------------------- demo


def _project_ref(xyz, proj, img_h, img_w):
    un = xyz @ proj[:3, :3] + proj[3:4, :3]
    reg = jnp.sum(xyz * proj[:3, 3][None, :], axis=-1) + proj[3, 3]
    homog = un / (reg[:, None] + 1e-4)
    x2d = ((homog[:, 0] + 1.0) * img_w - 1.0) * 0.5
    y2d = ((homog[:, 1] + 1.0) * img_h - 1.0) * 0.5
    return jnp.stack([x2d, y2d], axis=-1)


if __name__ == "__main__":
    key = jax.random.PRNGKey(0)
    ks = jax.random.split(key, 12)
    N, M, K, r = 256, 64, 8, 4
    H, W = 48, 64

    P_src = jnp.array([[0.8, 0.0, 0.0, 0.0],
                       [0.0, 0.8, 0.0, 0.0],
                       [0.0, 0.0, 0.5, 1.0],
                       [0.0, 0.0, 0.1, 1.5]], jnp.float32)
    P_tgt = P_src.at[3, 0].set(0.02).at[3, 1].set(-0.01)
    src_cam = Camera(P_src, H, W, 50.0, 50.0)
    tgt_cam = Camera(P_tgt, H, W, 50.0, 50.0)

    xy = jax.random.uniform(ks[0], (N, 2), minval=-0.5, maxval=0.5)
    z = jax.random.uniform(ks[1], (N, 1), minval=1.0, maxval=3.0)
    src_means3D = jnp.concatenate([xy, z], axis=-1)
    target_means3D = src_means3D + 0.02 * jax.random.normal(ks[2], (N, 3))
    opacity = jax.random.uniform(ks[3], (N, 1), minval=0.3, maxval=0.9)
    scales = jax.random.uniform(ks[4], (N, 3), minval=0.01, maxval=0.1)
    segmentation = jax.random.randint(ks[5], (N,), 0, 4)

    sel = jax.random.randint(ks[6], (M,), 0, N)
    m2d_src = _project_ref(src_means3D, P_src, H, W)
    src_particles = m2d_src[sel] + 0.3 * jax.random.normal(ks[7], (M, 2))
    particles_seg = segmentation[sel]
    target_particles = src_particles + 0.5 * jax.random.normal(ks[8], (M, 2))
    depthmap = 2.0 + 0.1 * jax.random.uniform(ks[9], (1, H, W))

    loss, depth_loss = tracking_loss(
        src_cam, tgt_cam, src_means3D, target_means3D, opacity, scales, segmentation,
        src_particles, target_particles, particles_seg, depthmap,
        K=K, r=r, per_segment=True)
    jax.block_until_ready((loss, depth_loss))
    print("KERNEL_OK")
</pallas_src>

<mosaic_0001>
module attributes {stable_mosaic.version = 11 : i64} {
  func.func @_project_kernel(%arg0: i32, %arg1: i32, %arg2: memref<2x4x4xf32, #tpu.memory_space<smem>>, %arg3: memref<2x4xf32, #tpu.memory_space<smem>>, %arg4: memref<1x3x1024xf32, #tpu.memory_space<vmem>>, %arg5: memref<1x1024xf32, #tpu.memory_space<vmem>>, %arg6: memref<1x1024xf32, #tpu.memory_space<vmem>>, %arg7: memref<1x8x1024xf32, #tpu.memory_space<vmem>>) attributes {dimension_semantics = [#tpu.dimension_semantics<arbitrary>, #tpu.dimension_semantics<parallel>], iteration_bounds = array<i64: 2, 1>, scalar_prefetch = 0 : i64, scratch_operands = 0 : i64, tpu.core_type = #tpu.core_type<tc>, window_params = [{transform_indices = @transform_0, window_bounds = array<i64: 2, 4, 4>}, {transform_indices = @transform_1, window_bounds = array<i64: 2, 4>}, {transform_indices = @transform_2, window_bounds = array<i64: 1, 3, 1024>}, {transform_indices = @transform_3, window_bounds = array<i64: 1, 1024>}, {transform_indices = @transform_4, window_bounds = array<i64: 1, 1024>}, {transform_indices = @transform_5, window_bounds = array<i64: 1, 8, 1024>}]} {
    %0 = arith.index_cast %arg0 : i32 to index
    %c0 = arith.constant 0 : index
    %1 = memref.load %arg3[%0, %c0] : memref<2x4xf32, #tpu.memory_space<smem>>
    %2 = arith.index_cast %arg0 : i32 to index
    %c1 = arith.constant 1 : index
    %3 = memref.load %arg3[%2, %c1] : memref<2x4xf32, #tpu.memory_space<smem>>
    %4 = arith.index_cast %arg0 : i32 to index
    %c2 = arith.constant 2 : index
    %5 = memref.load %arg3[%4, %c2] : memref<2x4xf32, #tpu.memory_space<smem>>
    %6 = arith.index_cast %arg0 : i32 to index
    %c3 = arith.constant 3 : index
    %7 = memref.load %arg3[%6, %c3] : memref<2x4xf32, #tpu.memory_space<smem>>
    %c0_0 = arith.constant 0 : index
    %c0_1 = arith.constant 0 : index
    %c0_2 = arith.constant 0 : index
    %8 = vector.load %arg4[%c0_0, %c0_1, %c0_2] : memref<1x3x1024xf32, #tpu.memory_space<vmem>>, vector<1x1x1024xf32>
    %9 = vector.shape_cast %8 : vector<1x1x1024xf32> to vector<1x1024xf32>
    %c0_3 = arith.constant 0 : index
    %c1_4 = arith.constant 1 : index
    %c0_5 = arith.constant 0 : index
    %10 = vector.load %arg4[%c0_3, %c1_4, %c0_5] : memref<1x3x1024xf32, #tpu.memory_space<vmem>>, vector<1x1x1024xf32>
    %11 = vector.shape_cast %10 : vector<1x1x1024xf32> to vector<1x1024xf32>
    %c0_6 = arith.constant 0 : index
    %c2_7 = arith.constant 2 : index
    %c0_8 = arith.constant 0 : index
    %12 = vector.load %arg4[%c0_6, %c2_7, %c0_8] : memref<1x3x1024xf32, #tpu.memory_space<vmem>>, vector<1x1x1024xf32>
    %13 = vector.shape_cast %12 : vector<1x1x1024xf32> to vector<1x1024xf32>
    %14 = arith.index_cast %arg0 : i32 to index
    %c0_9 = arith.constant 0 : index
    %c0_10 = arith.constant 0 : index
    %15 = memref.load %arg2[%14, %c0_9, %c0_10] : memref<2x4x4xf32, #tpu.memory_space<smem>>
    %16 = vector.broadcast %15 : f32 to vector<1x1024xf32>
    %17 = arith.mulf %9, %16 : vector<1x1024xf32>
    %18 = arith.index_cast %arg0 : i32 to index
    %c1_11 = arith.constant 1 : index
    %c0_12 = arith.constant 0 : index
    %19 = memref.load %arg2[%18, %c1_11, %c0_12] : memref<2x4x4xf32, #tpu.memory_space<smem>>
    %20 = vector.broadcast %19 : f32 to vector<1x1024xf32>
    %21 = arith.mulf %11, %20 : vector<1x1024xf32>
    %22 = arith.addf %17, %21 : vector<1x1024xf32>
    %23 = arith.index_cast %arg0 : i32 to index
    %c2_13 = arith.constant 2 : index
    %c0_14 = arith.constant 0 : index
    %24 = memref.load %arg2[%23, %c2_13, %c0_14] : memref<2x4x4xf32, #tpu.memory_space<smem>>
    %25 = vector.broadcast %24 : f32 to vector<1x1024xf32>
    %26 = arith.mulf %13, %25 : vector<1x1024xf32>
    %27 = arith.addf %22, %26 : vector<1x1024xf32>
    %28 = arith.index_cast %arg0 : i32 to index
    %c3_15 = arith.constant 3 : index
    %c0_16 = arith.constant 0 : index
    %29 = memref.load %arg2[%28, %c3_15, %c0_16] : memref<2x4x4xf32, #tpu.memory_space<smem>>
    %30 = vector.broadcast %29 : f32 to vector<1x1024xf32>
    %31 = arith.addf %27, %30 : vector<1x1024xf32>
    %32 = arith.index_cast %arg0 : i32 to index
    %c0_17 = arith.constant 0 : index
    %c1_18 = arith.constant 1 : index
    %33 = memref.load %arg2[%32, %c0_17, %c1_18] : memref<2x4x4xf32, #tpu.memory_space<smem>>
    %34 = vector.broadcast %33 : f32 to vector<1x1024xf32>
    %35 = arith.mulf %9, %34 : vector<1x1024xf32>
    %36 = arith.index_cast %arg0 : i32 to index
    %c1_19 = arith.constant 1 : index
    %c1_20 = arith.constant 1 : index
    %37 = memref.load %arg2[%36, %c1_19, %c1_20] : memref<2x4x4xf32, #tpu.memory_space<smem>>
    %38 = vector.broadcast %37 : f32 to vector<1x1024xf32>
    %39 = arith.mulf %11, %38 : vector<1x1024xf32>
    %40 = arith.addf %35, %39 : vector<1x1024xf32>
    %41 = arith.index_cast %arg0 : i32 to index
    %c2_21 = arith.constant 2 : index
    %c1_22 = arith.constant 1 : index
    %42 = memref.load %arg2[%41, %c2_21, %c1_22] : memref<2x4x4xf32, #tpu.memory_space<smem>>
    %43 = vector.broadcast %42 : f32 to vector<1x1024xf32>
    %44 = arith.mulf %13, %43 : vector<1x1024xf32>
    %45 = arith.addf %40, %44 : vector<1x1024xf32>
    %46 = arith.index_cast %arg0 : i32 to index
    %c3_23 = arith.constant 3 : index
    %c1_24 = arith.constant 1 : index
    %47 = memref.load %arg2[%46, %c3_23, %c1_24] : memref<2x4x4xf32, #tpu.memory_space<smem>>
    %48 = vector.broadcast %47 : f32 to vector<1x1024xf32>
    %49 = arith.addf %45, %48 : vector<1x1024xf32>
    %50 = arith.index_cast %arg0 : i32 to index
    %c0_25 = arith.constant 0 : index
    %c3_26 = arith.constant 3 : index
    %51 = memref.load %arg2[%50, %c0_25, %c3_26] : memref<2x4x4xf32, #tpu.memory_space<smem>>
    %52 = vector.broadcast %51 : f32 to vector<1x1024xf32>
    %53 = arith.mulf %9, %52 : vector<1x1024xf32>
    %54 = arith.index_cast %arg0 : i32 to index
    %c1_27 = arith.constant 1 : index
    %c3_28 = arith.constant 3 : index
    %55 = memref.load %arg2[%54, %c1_27, %c3_28] : memref<2x4x4xf32, #tpu.memory_space<smem>>
    %56 = vector.broadcast %55 : f32 to vector<1x1024xf32>
    %57 = arith.mulf %11, %56 : vector<1x1024xf32>
    %58 = arith.addf %53, %57 : vector<1x1024xf32>
    %59 = arith.index_cast %arg0 : i32 to index
    %c2_29 = arith.constant 2 : index
    %c3_30 = arith.constant 3 : index
    %60 = memref.load %arg2[%59, %c2_29, %c3_30] : memref<2x4x4xf32, #tpu.memory_space<smem>>
    %61 = vector.broadcast %60 : f32 to vector<1x1024xf32>
    %62 = arith.mulf %13, %61 : vector<1x1024xf32>
    %63 = arith.addf %58, %62 : vector<1x1024xf32>
    %64 = arith.index_cast %arg0 : i32 to index
    %c3_31 = arith.constant 3 : index
    %c3_32 = arith.constant 3 : index
    %65 = memref.load %arg2[%64, %c3_31, %c3_32] : memref<2x4x4xf32, #tpu.memory_space<smem>>
    %66 = vector.broadcast %65 : f32 to vector<1x1024xf32>
    %67 = arith.addf %63, %66 : vector<1x1024xf32>
    %cst = arith.constant 9.99999974E-5 : f32
    %68 = vector.broadcast %cst : f32 to vector<1x1024xf32>
    %69 = arith.addf %67, %68 : vector<1x1024xf32>
    %cst_33 = arith.constant 1.000000e+00 : f32
    %70 = vector.broadcast %cst_33 : f32 to vector<1x1024xf32>
    %71 = arith.divf %70, %69 : vector<1x1024xf32>
    %72 = arith.mulf %31, %71 : vector<1x1024xf32>
    %cst_34 = arith.constant 1.000000e+00 : f32
    %73 = vector.broadcast %cst_34 : f32 to vector<1x1024xf32>
    %74 = arith.addf %72, %73 : vector<1x1024xf32>
    %75 = vector.broadcast %1 : f32 to vector<1x1024xf32>
    %76 = arith.mulf %74, %75 : vector<1x1024xf32>
    %cst_35 = arith.constant 1.000000e+00 : f32
    %77 = vector.broadcast %cst_35 : f32 to vector<1x1024xf32>
    %78 = arith.subf %76, %77 : vector<1x1024xf32>
    %cst_36 = arith.constant 5.000000e-01 : f32
    %79 = vector.broadcast %cst_36 : f32 to vector<1x1024xf32>
    %80 = arith.mulf %78, %79 : vector<1x1024xf32>
    %81 = arith.mulf %49, %71 : vector<1x1024xf32>
    %cst_37 = arith.constant 1.000000e+00 : f32
    %82 = vector.broadcast %cst_37 : f32 to vector<1x1024xf32>
    %83 = arith.addf %81, %82 : vector<1x1024xf32>
    %84 = vector.broadcast %3 : f32 to vector<1x1024xf32>
    %85 = arith.mulf %83, %84 : vector<1x1024xf32>
    %cst_38 = arith.constant 1.000000e+00 : f32
    %86 = vector.broadcast %cst_38 : f32 to vector<1x1024xf32>
    %87 = arith.subf %85, %86 : vector<1x1024xf32>
    %cst_39 = arith.constant 5.000000e-01 : f32
    %88 = vector.broadcast %cst_39 : f32 to vector<1x1024xf32>
    %89 = arith.mulf %87, %88 : vector<1x1024xf32>
    %c0_40 = arith.constant 0 : index
    %c0_41 = arith.constant 0 : index
    %90 = vector.load %arg6[%c0_40, %c0_41] : memref<1x1024xf32, #tpu.memory_space<vmem>>, vector<1x1024xf32>
    %c0_42 = arith.constant 0 : index
    %c0_43 = arith.constant 0 : index
    %91 = vector.load %arg6[%c0_42, %c0_43] : memref<1x1024xf32, #tpu.memory_space<vmem>>, vector<1x1024xf32>
    %92 = arith.mulf %90, %91 : vector<1x1024xf32>
    %93 = vector.broadcast %5 : f32 to vector<1x1024xf32>
    %94 = arith.mulf %93, %71 : vector<1x1024xf32>
    %95 = vector.broadcast %7 : f32 to vector<1x1024xf32>
    %96 = arith.mulf %95, %71 : vector<1x1024xf32>
    %97 = arith.mulf %92, %94 : vector<1x1024xf32>
    %98 = arith.mulf %97, %94 : vector<1x1024xf32>
    %cst_44 = arith.constant 3.000000e-01 : f32
    %99 = vector.broadcast %cst_44 : f32 to vector<1x1024xf32>
    %100 = arith.addf %98, %99 : vector<1x1024xf32>
    %101 = arith.mulf %92, %96 : vector<1x1024xf32>
    %102 = arith.mulf %101, %96 : vector<1x1024xf32>
    %cst_45 = arith.constant 3.000000e-01 : f32
    %103 = vector.broadcast %cst_45 : f32 to vector<1x1024xf32>
    %104 = arith.addf %102, %103 : vector<1x1024xf32>
    %105 = arith.mulf %100, %104 : vector<1x1024xf32>
    %cst_46 = arith.constant 0.000000e+00 : f32
    %106 = vector.broadcast %cst_46 : f32 to vector<1x1024xf32>
    %c0_47 = arith.constant 0 : index
    %c0_48 = arith.constant 0 : index
    %c0_49 = arith.constant 0 : index
    %107 = vector.load %arg7[%c0_47, %c0_48, %c0_49] : memref<1x8x1024xf32, #tpu.memory_space<vmem>>, vector<1x1x1024xf32>
    %108 = vector.shape_cast %107 : vector<1x1x1024xf32> to vector<1x1024xf32>
    %109 = vector.shape_cast %80 : vector<1x1024xf32> to vector<1x1x1024xf32>
    tpu.vector_store %arg7[%c0_47, %c0_48, %c0_49], %109 {strides = array<i32>} : memref<1x8x1024xf32, #tpu.memory_space<vmem>>, vector<1x1x1024xf32>,
    %c0_50 = arith.constant 0 : index
    %c1_51 = arith.constant 1 : index
    %c0_52 = arith.constant 0 : index
    %110 = vector.load %arg7[%c0_50, %c1_51, %c0_52] : memref<1x8x1024xf32, #tpu.memory_space<vmem>>, vector<1x1x1024xf32>
    %111 = vector.shape_cast %110 : vector<1x1x1024xf32> to vector<1x1024xf32>
    %112 = vector.shape_cast %89 : vector<1x1024xf32> to vector<1x1x1024xf32>
    tpu.vector_store %arg7[%c0_50, %c1_51, %c0_52], %112 {strides = array<i32>} : memref<1x8x1024xf32, #tpu.memory_space<vmem>>, vector<1x1x1024xf32>,
    %c0_53 = arith.constant 0 : index
    %c2_54 = arith.constant 2 : index
    %c0_55 = arith.constant 0 : index
    %113 = vector.load %arg7[%c0_53, %c2_54, %c0_55] : memref<1x8x1024xf32, #tpu.memory_space<vmem>>, vector<1x1x1024xf32>
    %114 = vector.shape_cast %113 : vector<1x1x1024xf32> to vector<1x1024xf32>
    %115 = vector.shape_cast %67 : vector<1x1024xf32> to vector<1x1x1024xf32>
    tpu.vector_store %arg7[%c0_53, %c2_54, %c0_55], %115 {strides = array<i32>} : memref<1x8x1024xf32, #tpu.memory_space<vmem>>, vector<1x1x1024xf32>,
    %116 = arith.divf %100, %105 : vector<1x1024xf32>
    %c0_56 = arith.constant 0 : index
    %c3_57 = arith.constant 3 : index
    %c0_58 = arith.constant 0 : index
    %117 = vector.load %arg7[%c0_56, %c3_57, %c0_58] : memref<1x8x1024xf32, #tpu.memory_space<vmem>>, vector<1x1x1024xf32>
    %118 = vector.shape_cast %117 : vector<1x1x1024xf32> to vector<1x1024xf32>
    %119 = vector.shape_cast %116 : vector<1x1024xf32> to vector<1x1x1024xf32>
    tpu.vector_store %arg7[%c0_56, %c3_57, %c0_58], %119 {strides = array<i32>} : memref<1x8x1024xf32, #tpu.memory_space<vmem>>, vector<1x1x1024xf32>,
    %c0_59 = arith.constant 0 : index
    %c4 = arith.constant 4 : index
    %c0_60 = arith.constant 0 : index
    %120 = vector.load %arg7[%c0_59, %c4, %c0_60] : memref<1x8x1024xf32, #tpu.memory_space<vmem>>, vector<1x1x1024xf32>
    %121 = vector.shape_cast %120 : vector<1x1x1024xf32> to vector<1x1024xf32>
    %122 = vector.shape_cast %106 : vector<1x1024xf32> to vector<1x1x1024xf32>
    tpu.vector_store %arg7[%c0_59, %c4, %c0_60], %122 {strides = array<i32>} : memref<1x8x1024xf32, #tpu.memory_space<vmem>>, vector<1x1x1024xf32>,
    %123 = arith.divf %104, %105 : vector<1x1024xf32>
    %c0_61 = arith.constant 0 : index
    %c5 = arith.constant 5 : index
    %c0_62 = arith.constant 0 : index
    %124 = vector.load %arg7[%c0_61, %c5, %c0_62] : memref<1x8x1024xf32, #tpu.memory_space<vmem>>, vector<1x1x1024xf32>
    %125 = vector.shape_cast %124 : vector<1x1x1024xf32> to vector<1x1024xf32>
    %126 = vector.shape_cast %123 : vector<1x1024xf32> to vector<1x1x1024xf32>
    tpu.vector_store %arg7[%c0_61, %c5, %c0_62], %126 {strides = array<i32>} : memref<1x8x1024xf32, #tpu.memory_space<vmem>>, vector<1x1x1024xf32>,
    %c0_63 = arith.constant 0 : index
    %c0_64 = arith.constant 0 : index
    %127 = vector.load %arg5[%c0_63, %c0_64] : memref<1x1024xf32, #tpu.memory_space<vmem>>, vector<1x1024xf32>
    %c0_65 = arith.constant 0 : index
    %c6 = arith.constant 6 : index
    %c0_66 = arith.constant 0 : index
    %128 = vector.load %arg7[%c0_65, %c6, %c0_66] : memref<1x8x1024xf32, #tpu.memory_space<vmem>>, vector<1x1x1024xf32>
    %129 = vector.shape_cast %128 : vector<1x1x1024xf32> to vector<1x1024xf32>
    %130 = vector.shape_cast %127 : vector<1x1024xf32> to vector<1x1x1024xf32>
    tpu.vector_store %arg7[%c0_65, %c6, %c0_66], %130 {strides = array<i32>} : memref<1x8x1024xf32, #tpu.memory_space<vmem>>, vector<1x1x1024xf32>,
    %c0_67 = arith.constant 0 : index
    %c7 = arith.constant 7 : index
    %c0_68 = arith.constant 0 : index
    %131 = vector.load %arg7[%c0_67, %c7, %c0_68] : memref<1x8x1024xf32, #tpu.memory_space<vmem>>, vector<1x1x1024xf32>
    %132 = vector.shape_cast %131 : vector<1x1x1024xf32> to vector<1x1024xf32>
    %133 = vector.shape_cast %106 : vector<1x1024xf32> to vector<1x1x1024xf32>
    tpu.vector_store %arg7[%c0_67, %c7, %c0_68], %133 {strides = array<i32>} : memref<1x8x1024xf32, #tpu.memory_space<vmem>>, vector<1x1x1024xf32>,
    return
  }
  func.func @transform_0(%arg0: i32, %arg1: i32) -> (i32, i32, i32) {
    %c0_i32 = arith.constant 0 : i32
    %c0_i32_0 = arith.constant 0 : i32
    %c0_i32_1 = arith.constant 0 : i32
    %c0_i32_2 = arith.constant 0 : i32
    return %c0_i32, %c0_i32_0, %c0_i32_1 : i32, i32, i32
  }
  func.func @transform_1(%arg0: i32, %arg1: i32) -> (i32, i32) {
    %c0_i32 = arith.constant 0 : i32
    %c0_i32_0 = arith.constant 0 : i32
    %c0_i32_1 = arith.constant 0 : i32
    return %c0_i32, %c0_i32_0 : i32, i32
  }
  func.func @transform_2(%arg0: i32, %arg1: i32) -> (i32, i32, i32) {
    %c0_i32 = arith.constant 0 : i32
    %c0_i32_0 = arith.constant 0 : i32
    return %arg0, %c0_i32, %arg1 : i32, i32, i32
  }
  func.func @transform_3(%arg0: i32, %arg1: i32) -> (i32, i32) {
    %c0_i32 = arith.constant 0 : i32
    %c0_i32_0 = arith.constant 0 : i32
    return %c0_i32, %arg1 : i32, i32
  }
  func.func @transform_4(%arg0: i32, %arg1: i32) -> (i32, i32) {
    %c0_i32 = arith.constant 0 : i32
    %c0_i32_0 = arith.constant 0 : i32
    return %c0_i32, %arg1 : i32, i32
  }
  func.func @transform_5(%arg0: i32, %arg1: i32) -> (i32, i32, i32) {
    %c0_i32 = arith.constant 0 : i32
    %c0_i32_0 = arith.constant 0 : i32
    return %arg0, %c0_i32, %arg1 : i32, i32, i32
  }
}

</mosaic_0001>

<bundles_post_ra>
// kernel: tpu_custom_call.1
= control target key start
LH: loop header
LB: loop body
LE: loop exit
PB: predicated region body
PF: predicated region fallthrough
CT: control target
= control target key end

     0   :  { %s1088_s0 = inlined_call_operand.vmem [shape: f32[2,4,4], index: 0, kind: input, shape index: {}]   ;;  %s1089_s1 = inlined_call_operand.vmem [shape: f32[2,4], index: 1, kind: input, shape index: {}]   ;;  %s1090_s2 = inlined_call_operand.vmem [shape: f32[2,3,1024], index: 2, kind: input, shape index: {}]   ;;  %s1091_s3 = inlined_call_operand.vmem [shape: f32[1,1024], index: 3, kind: input, shape index: {}]   ;;  %s1092_s4 = inlined_call_operand.vmem [shape: f32[1,1024], index: 4, kind: input, shape index: {}]   ;;  %s1093_s5 = inlined_call_operand.hbm [shape: f32[2,8,1024], index: 5, kind: output, shape index: {}]  }
   0x1   :  { %1100 = sst [smem:[#allocation12_spill]] %s1088_s0 }
   0x2   :  { %1101 = sst [smem:[#allocation13_spill]] %s1089_s1 }
   0x3   :  { %1102 = sst [smem:[#allocation14_spill]] %s1090_s2 }
   0x4   :  { %1103 = sst [smem:[#allocation15_spill]] %s1091_s3 }
   0x5   :  { %10 = vsyncpa [#allocation4], 0 }
   0x6   :  { %11 = vsyncpa [#allocation6], 0 }
   0x7   :  { %12 = vsyncpa [#allocation3], 0 }
   0x8   :  { %14 = vsyncpa [#allocation3 + $0x1], 0  ;;  %s878_s18 = smov 0   ;;  %s880_s19 = smov 0  }
   0x9   :  { %s882_s20 = smov 0   ;;  %s884_s21 = smov 0  }
   0xa   :  { %s886_s22 = smov 0   ;;  %s888_s23 = smov 0  }
   0xb LB: > { %s586_s24 = sadd.s32 4294967295, %s840_s23   ;;  %s587_s25 = sadd.s32 4294967294, %s840_s23   ;;  %s840_s23 = sphi %s888_s23, %s20_s23   ;;  %s836_s22 = sphi %s886_s22, %s1124_s22   ;;  %s832_s21 = sphi %s884_s21, %s1123_s21   ;;  %s828_s20 = sphi %s882_s20, %s1122_s20   ;;  %s824_s19 = sphi %s880_s19, %s1121_s19   ;;  %s820_s18 = sphi %s878_s18, %s1120_s18  }
   0xc   : > { %s32_s26 = sadd.s32 1, %s836_s22  ;;  %s163_s27 = sadd.s32 1, %s828_s20 }
   0xd   : > { %p34_p0 = scmp.ge.s32.totalorder %s32_s26, 2  ;;  %p173_p1 = scmp.ne.s32.totalorder %s828_s20, %s824_s19 }
   0xe   : > { %p174_p2 = scmp.eq.s32.totalorder %s586_s24, 1  ;;  %p179_p3 = scmp.ne.s32.totalorder %s824_s19, %s820_s18 }
   0xf   : > { %s1126_s26 = smov (%p34_p0, %s32_s26), 0  ;;  %p180_p5 = scmp.eq.s32.totalorder %s587_s25, 1 }
  0x10   : > { %1104 = sst [smem:[#allocation11_spill]] %s1126_s26  ;;  %p918_p4 = por %p174_p2, %p173_p1 }
  0x11   : > { %s158_s29 = ssub.s32 %s836_s22, %s1126_s26  ;;  %p588_p6 = scmp.ge.s32.totalorder %s840_s23, 1 }
  0x12   : > { %s1105_s28 = scalar_select %p918_p4, 1, 0 }
  0x13   : > { %p161_p7 = scmp.eq.s32.totalorder %s158_s29, 0  ;;  %p925_p8 = por %p180_p5, %p179_p3 }
  0x14   : > { %p187_p9 = scmp.lt.s32.totalorder %s840_s23, 3  ;;  %p937_p11 = scmp.eq.s32.totalorder %s586_s24, 0 }
  0x15   : > { %s1106_s30 = scalar_select %p925_p8, 1, 0 }
  0x16   : > { %s931_s6 = scalar_select %p161_p7, %s828_s20, %s163_s27  }
  0x17   : > { %p933_p10 = pnand %p588_p6, %p187_p9  ;;  %s1109_s0 = sld [smem:[#allocation12_spill]] }
  0x18   : > { %s1108_s8 = scalar_select %p937_p11, 1, 0 }
  0x19   : > { %s1107_s7 = scalar_select %p933_p10, 1, 0 }
  0x1a   : > { %p651_p12 = pneg %p933_p10  ;;  %s1111_s1 = sld [smem:[#allocation13_spill]] }
  0x1c   : > { %p948_p13 = pnand %p937_p11, %p651_p12 }
  0x1d   : > { %s199_s11 = sshll.u32 %s1109_s0, 4  ;;  %s200_s11 = int_to_ptr.vmem [resolvable:$true] %s199_s11 }
  0x1e   : > { %s724_s16 = scalar_lea.vmem %s200_s11, 128  ;;  %p726_p1 = pneg %p948_p13 }
  0x1f   : > { %p725_p0 = scmp.ne.s32.totalorder %s200_s11, %s724_s16  ;;  %p732_p5 = scmp.lt.s32.totalorder %s200_s11, %s200_s11 }
  0x20   : > { %s213_s15 = sshll.u32 %s1111_s1, 4  ;;  %p733_p6 = scmp.lt.s32.totalorder %s724_s16, %s724_s16  ;;  %s214_s15 = int_to_ptr.vmem [resolvable:$true] %s213_s15 }
  0x21   : > { %p727_p2 = pnand %p726_p1, %p725_p0 }
  0x22   : > { %p734_p7 = por %p733_p6, %p732_p5 }
  0x23   : > { %p728_p3 = pneg %p727_p2 }
  0x25   : > { %p735_p9 = pnand %p734_p7, %p728_p3 }
  0x27   : > { %738 = shalt.err (!%p735_p9)
}
  0x28   : > { %s842_s17 = smov [#allocation2]   ;;  %s843_s24 = smov 64  }
  0x29   : > { %s844_s25 = smov 4   ;;  %s739_s27 = scalar_lea.vmem %s214_s15, 32 }
  0x2a   : > { %654 = dma.vmem_to_smem (!%p948_p13), %s200_s11, 128, %s842_s17, [#allocation4], %s843_s24, %s843_s24, %s844_s25  }
  0x2b   : > { %p740_p12 = scmp.ne.s32.totalorder %s214_s15, %s739_s27  ;;  %p747_p0 = scmp.lt.s32.totalorder %s214_s15, %s214_s15 }
  0x2c   : > { %p748_p2 = scmp.lt.s32.totalorder %s739_s27, %s739_s27 }
  0x2d   : > { %p742_p8 = pnand %p740_p12, %p726_p1 }
  0x2e   : > { %p749_p11 = por %p748_p2, %p747_p0 }
  0x2f   : > { %p743_p4 = pneg %p742_p8 }
  0x31   : > { %p750_p10 = pnand %p749_p11, %p743_p4 }
  0x33   : > { %753 = shalt.err (!%p750_p10)
}
  0x34   : > { %s845_s29 = smov [#allocation5]   ;;  %p1112_p3 = scmp.ne.s32.totalorder %s1107_s7, 0 }
  0x35   : > { %657 = dma.vmem_to_smem (!%p948_p13), %s214_s15, 32, %s845_s29, [#allocation6]  }
  0x36   : > { %255 = sbr.rel (%p1112_p3) target bundleno = 144 (0x90), region = 40  ;;  %p1113_p5 = scmp.ne.s32.totalorder (!%p1112_p3), %s1108_s8, 0 }
  0x3d   : > { %807 = dma.done.wait (%p1113_p5), [#allocation4], 128  }
  0x3e   : > { %809 = vsyncadd (%p1113_p5), [#allocation4], 4294967168 }
  0x3f   : > { %811 = dma.done.wait (%p1113_p5), [#allocation6], 32  }
  0x40   : > { %813 = vsyncadd (%p1113_p5), [#allocation6], 4294967264 }
  0x41   : > { %265 = sfence }
  0x42   : > { %s1098_s7 = sand.u32 1, %s824_s19   ;;  %p301_p4 = scmp.lt.s32.totalorder %s832_s21, 1  ;;  %v846_v1 = vmov 0.0   ;;  %v407_v34 = vld [vmem:[%s1092_s4] sm:$0xff] }
  0x43   : > { %s1114_s3 = sld [smem:[#allocation15_spill]]  ;;  %s597_s11 = sshll.u32 %s1098_s7, 6  ;;  %v408_v39 = vmul.f32 %v407_v34, %v407_v34 }
  0x44   : > { %s302_s12 = scalar_select %p301_p4, %s832_s21, 1 }
  0x45   : > { %s985_s13 = scalar_lea.vmem [#allocation7], %s597_s11  ;;  %s630_s14 = sshll.u32 %s832_s21, 9 }
  0x46   : > { %616 = vst [vmem:[%s985_s13 + $0x4] ss:$8 sm:$0xf] %v846_v1  ;;  %617 = vst [vmem:[%s985_s13 + $0x4] ss:$8 sm:$0xf0] %v846_v1 }
  0x47   : > { %622 = vst [vmem:[%s985_s13 + $0x7] ss:$8 sm:$0xf] %v846_v1  ;;  %623 = vst [vmem:[%s985_s13 + $0x7] ss:$8 sm:$0xf0] %v846_v1 }
  0x48   : > { %s629_s8 = sshll.u32 %s302_s12, 5  ;;  %s994_s15 = sld [smem:[#allocation2 + %s630_s14]] }
  0x49   : > { %v440_v0 = vld [vmem:[%s1114_s3] sm:$0xff]  ;;  %s1115_s2 = sld [smem:[#allocation14_spill]]  ;;  %s632_s25 = sadd.s32 128, %s630_s14 }
  0x4a   : > { %620 = vst [vmem:[%s985_s13 + $0x6] ss:$8 sm:$0xf] %v440_v0  ;;  %621 = vst [vmem:[%s985_s13 + $0x6] ss:$8 sm:$0xf0] %v440_v0 }
  0x4b   : > { %s999_s27 = sld [smem:[#allocation2 + %s632_s25]]  ;;  %s634_s29 = sadd.s32 256, %s630_s14 }
  0x4c   : > { %s1001_s9 = sadd.s32 384, %s630_s14  ;;  %s374_s10 = sadd.s32 3, %s630_s14 }
  0x4d   : > { %s375_s11 = sld [smem:[#allocation2 + %s374_s10]]  ;;  %s378_s7 = sadd.s32 3, %s632_s25 }
  0x4e   : > { %s379_s0 = sld [smem:[#allocation2 + %s378_s7]]  ;;  %s383_s1 = sadd.s32 3, %s634_s29  ;;  %v337_v11 = vstv %s994_s15 }
  0x4f   : > { %s308_s24 = scalar_lea.vmem %s1115_s2, %s629_s8  ;;  %s384_s12 = sld [smem:[#allocation2 + %s383_s1]] }
  0x50   : > { %s388_s3 = sadd.s32 3, %s1001_s9  ;;  %v329_v2 = vld [vmem:[%s308_s24] ss:$4 sm:$0xff]  ;;  %s1006_s16 = sld [smem:[#allocation2 + %s634_s29]]  ;;  %v601_v3 = vld [vmem:[%s308_s24 + $0x1] ss:$4 sm:$0xff] }
  0x51   : > { %s1004_s26 = sld [smem:[#allocation2 + %s388_s3]]  ;;  %s356_s8 = sadd.s32 1, %s630_s14  ;;  %v602_v4 = vld [vmem:[%s308_s24 + $0x2] ss:$4 sm:$0xff]  ;;  %v342_v12 = vstv %s999_s27  ;;  %v338_v18 = vmul.f32 %v337_v11, %v329_v2 }
  0x52   : > { %s357_s17 = sld [smem:[#allocation2 + %s356_s8]]  ;;  %s360_s2 = sadd.s32 1, %s632_s25  ;;  %v343_v19 = vmul.f32 %v601_v3, %v342_v12 }
  0x53   : > { %v376_v5 = vstv %s375_s11  ;;  %s361_s7 = sld [smem:[#allocation2 + %s360_s2]]  ;;  %s365_s10 = sadd.s32 1, %s634_s29 }
  0x54   : > { %v377_v6 = vmul.f32 %v376_v5, %v329_v2  ;;  %v380_v7 = vstv %s379_s0  ;;  %s366_s1 = sld [smem:[#allocation2 + %s365_s10]]  ;;  %s370_s3 = sadd.s32 1, %s1001_s9  ;;  %v344_v26 = vadd.f32 %v343_v19, %v338_v18 }
  0x55   : > { %v381_v8 = vmul.f32 %v601_v3, %v380_v7  ;;  %v385_v9 = vstv %s384_s12  ;;  %s1013_s14 = sshll.u32 %s832_s21, 7  ;;  %s353_s0 = sld [smem:[#allocation2 + %s1001_s9]] }
  0x56   : > { %v386_v10 = vmul.f32 %v602_v4, %v385_v9  ;;  %v348_v22 = vstv %s1006_s16  ;;  %s371_s2 = sld [smem:[#allocation2 + %s370_s3]]  ;;  %s327_s15 = sadd.s32 3, %s1013_s14 }
  0x57   : > { %v382_v13 = vadd.f32 %v381_v8, %v377_v6  ;;  %v390_v14 = vstv %s1004_s26  ;;  %s325_s26 = sadd.s32 2, %s1013_s14  ;;  %v349_v27 = vmul.f32 %v602_v4, %v348_v22  ;;  %s328_s25 = sld [smem:[#allocation5 + %s327_s15]] }
  0x58   : > { %v358_v15 = vstv %s357_s17  ;;  %s326_s24 = sld [smem:[#allocation5 + %s325_s26]]  ;;  %s323_s27 = sadd.s32 1, %s1013_s14 }
  0x59   : > { %v387_v16 = vadd.f32 %v386_v10, %v382_v13  ;;  %v362_v17 = vstv %s361_s7  ;;  %v359_v20 = vmul.f32 %v358_v15, %v329_v2  ;;  %v350_v30 = vadd.f32 %v349_v27, %v344_v26  ;;  %s322_s29 = sld [smem:[#allocation5 + %s1013_s14]]  ;;  %s637_s16 = sshll.u32 %s832_s21, 10 }
  0x5a   : > { %v363_v21 = vmul.f32 %v601_v3, %v362_v17  ;;  %v367_v24 = vstv %s366_s1  ;;  %s324_s9 = sld [smem:[#allocation5 + %s323_s27]]  ;;  %s464_s8 = sshll.u32 %s985_s13, 4  ;;  %s1037_s8 = int_to_ptr.vmem [resolvable:$true] %s464_s8 }
  0x5b   : > { %v391_v23 = vadd.f32 %v390_v14, %v387_v16  ;;  %v368_v29 = vmul.f32 %v602_v4, %v367_v24  ;;  %v354_v32 = vstv %s353_s0  ;;  %s1035_s10 = scalar_lea.hbm %s1093_s5, %s637_s16  ;;  %s1116_s1 = sand.u32 1, %s824_s19  }
  0x5c   : > { %v364_v28 = vadd.f32 %v363_v21, %v359_v20  ;;  %v372_v33 = vstv %s371_s2  ;;  %v355_v35 = vadd.f32 %v354_v32, %v350_v30  ;;  %s448_s21 = scalar_lea.sflag [#allocation3], %s1116_s1  ;;  %s754_s3 = scalar_lea.vmem %s1037_s8, 1024 }
  0x5d   : > { %v392_v25 = vadd.f32 0.0001, %v391_v23  ;;  %612 = vst [vmem:[%s985_s13 + $0x2] ss:$8 sm:$0xf] %v391_v23  ;;  %v411_v38 = vstv %s328_s25  ;;  %p755_p8 = scmp.ne.s32.totalorder %s1037_s8, %s754_s3  ;;  %p1117_p10 = scmp.ne.s32.totalorder %s1105_s28, 0 }
  0x5e   : > { %613 = vst [vmem:[%s985_s13 + $0x2] ss:$8 sm:$0xf0] %v391_v23  ;;  %v369_v31 = vadd.f32 %v368_v29, %v364_v28  ;;  %v409_v37 = vstv %s326_s24  ;;  %s847_s14 = smov [#allocation7]  }
  0x5f   : > { %720 = vrcp.f32 %v392_v25  ;;  %v397_v45 = vstv %s322_s29  ;;  %p756_p11 = pnand %p755_p8, %p1117_p10  ;;  %s758_s0 = sshll.u32 %s847_s14, 4  ;;  %s759_s0 = int_to_ptr.vmem [resolvable:$false] %s758_s0 }
  0x60   : > { %v373_v36 = vadd.f32 %v372_v33, %v369_v31  ;;  %v403_v46 = vstv %s324_s9  ;;  %s760_s2 = scalar_lea.vmem %s759_s0, 2048  ;;  %p761_p1 = scmp.lt.s32.totalorder %s1037_s8, %s759_s0 }
  0x61   : > { %p757_p13 = pneg %p756_p11  ;;  %p762_p6 = scmp.lt.s32.totalorder %s760_s2, %s754_s3 }
  0x63   : > { %p763_p7 = por %p762_p6, %p761_p1 }
  0x65   : > { %p764_p9 = pnand %p763_p7, %p757_p13 }
  0x69   : > { %v721_v40 = vpop.eup %720 }
  0x6a   : > { %v395_v41 = vmul.f32 %v721_v40, %v355_v35  ;;  %v401_v42 = vmul.f32 %v721_v40, %v373_v36  ;;  %v410_v43 = vmul.f32 %v721_v40, %v409_v37  ;;  %v412_v44 = vmul.f32 %v721_v40, %v411_v38 }
  0x6c   : > { %v396_v47 = vadd.f32 1.0, %v395_v41  ;;  %v402_v48 = vadd.f32 1.0, %v401_v42  ;;  %v413_v49 = vmul.f32 %v410_v43, %v408_v39  ;;  %v416_v50 = vmul.f32 %v412_v44, %v408_v39 }
  0x6e   : > { %v398_v51 = vmul.f32 %v397_v45, %v396_v47  ;;  %v404_v52 = vmul.f32 %v403_v46, %v402_v48  ;;  %v414_v53 = vmul.f32 %v413_v49, %v410_v43  ;;  %v417_v54 = vmul.f32 %v416_v50, %v412_v44 }
  0x70   : > { %v608_v55 = vadd.f32 -1.0, %v398_v51  ;;  %v609_v56 = vadd.f32 -1.0, %v404_v52  ;;  %v415_v57 = vadd.f32 0.3, %v414_v53  ;;  %v418_v58 = vadd.f32 0.3, %v417_v54 }
  0x72   : > { %v400_v59 = vmul.f32 0.5, %v608_v55  ;;  %v406_v60 = vmul.f32 0.5, %v609_v56  ;;  %v419_v61 = vmul.f32 %v418_v58, %v415_v57 }
  0x74   : > { %420 = vst [vmem:[%s985_s13] ss:$8 sm:$0xf] %v400_v59  ;;  %421 = vst [vmem:[%s985_s13] ss:$8 sm:$0xf0] %v400_v59  ;;  %722 = vrcp.f32 %v419_v61 }
  0x75   : > { %610 = vst [vmem:[%s985_s13 + $0x1] ss:$8 sm:$0xf] %v406_v60  ;;  %611 = vst [vmem:[%s985_s13 + $0x1] ss:$8 sm:$0xf0] %v406_v60 }
  0x7e   : > { %v723_v62 = vpop.eup %722 }
  0x7f   : > { %v429_v63 = vmul.f32 %v723_v62, %v415_v57  ;;  %v436_v0 = vmul.f32 %v723_v62, %v418_v58 }
  0x81   : > { %614 = vst [vmem:[%s985_s13 + $0x3] ss:$8 sm:$0xf] %v429_v63  ;;  %615 = vst [vmem:[%s985_s13 + $0x3] ss:$8 sm:$0xf0] %v429_v63 }
  0x82   : > { %618 = vst [vmem:[%s985_s13 + $0x5] ss:$8 sm:$0xf] %v436_v0  ;;  %619 = vst [vmem:[%s985_s13 + $0x5] ss:$8 sm:$0xf0] %v436_v0 }
  0x83   : > { %767 = shalt.err (!%p764_p9)
}
  0x84   : > { %s768_s13 = scalar_lea.hbm %s1035_s10, 1024  ;;  %s772_s24 = scalar_lea.hbm %s1093_s5, 2048 }
  0x85   : > { %p769_p12 = scmp.ne.s32.totalorder %s1035_s10, %s768_s13  ;;  %p773_p3 = scmp.lt.u32.totalorder %s1035_s10, %s1093_s5 }
  0x86   : > { %p774_p5 = scmp.lt.u32.totalorder %s772_s24, %s768_s13  ;;  %p776_p8 = scmp.lt.u32.totalorder %s768_s13, %s1035_s10 }
  0x87   : > { %p770_p0 = pnand %p769_p12, %p1117_p10 }
  0x88   : > { %p775_p4 = por %p774_p5, %p773_p3 }
  0x89   : > { %p771_p2 = pneg %p770_p0 }
  0x8a   : > { %p777_p11 = por %p776_p8, %p775_p4 }
  0x8c   : > { %p778_p13 = pnand %p777_p11, %p771_p2 }
  0x8e   : > { %781 = shalt.err (!%p778_p13)
}
  0x8f   : > { %649 = dma.vmem_to_hbm [thread:$0]  (%p1117_p10), %s1037_s8, 1024, %s1035_s10, %s448_s21  }
  0x90 PF: > { %p666_p1 = scmp.ge.s32.totalorder %s840_s23, 2  ;;  %s476_s29 = sand.u32 1, %s820_s18  }
  0x91   : > { %p1118_p6 = scmp.ne.s32.totalorder %s1106_s30, 0  ;;  %s477_s9 = scalar_lea.sflag [#allocation3], %s476_s29 }
  0x93   : > { %p659_p7 = pnand %p666_p1, %p1118_p6 }
  0x95   : > { %815 = dma.done.wait (!%p659_p7), %s477_s9, 1024  }
  0x96   : > { %817 = vsyncadd (!%p659_p7), %s477_s9, 4294966272  ;;  %s20_s23 = sadd.s32 1, %s840_s23   ;;  %s1119_s28 = sld [smem:[#allocation11_spill]] }
  0x97   : > { %p17_p9 = scmp.ge.s32.totalorder %s20_s23, 4   ;;  %s1120_s18 = smov %s824_s19 }
  0x98   : > { %s1121_s19 = smov %s828_s20  ;;  %s1122_s20 = smov %s931_s6 }
  0x99   : > { %s1123_s21 = smov %s836_s22  ;;  %19 = sbr.rel (!%p17_p9) target bundleno = 11 (0xb), region = 99 }
  0x9c   : > { %s1124_s22 = smov %s1119_s28 }
  0xa0   :  { %482 = vsyncpa [#allocation3], 1 }
  0xa1   :  { %484 = vsyncpa [#allocation3 + $0x1], 1 }
  0xa2   :  { %485 = vsyncpa [#allocation4], 1 }
  0xa3   :  { %487 = vsyncpa [#allocation4 + $0x1], 1 }
  0xa4   :  { %488 = vsyncpa [#allocation6], 1 }

</bundles_post_ra>
